<compile_context>
chip_gen: v7x
topology: tpu7x:2x2x1
jax: 0.10.0
libtpu: 0.0.40
codegen_flags: <defaults>
</compile_context>

<pallas_src>
import functools

import jax
import jax.numpy as jnp
from jax.experimental import pallas as pl
from jax.experimental.pallas import tpu as pltpu


def chebynet_kernel(x_ref, l_ref, w_ref, o_ref, *, batch, n_nodes, order):
    """Single-invocation kernel.

    x_ref : (B*N, Fin)        batch-major flattened node features
    l_ref : (N, N)            graph Laplacian/adjacency
    w_ref : (K*Fin, Fout_pad) per-order weights stacked along the contraction axis
    o_ref : (B*N, Fout_pad)   lane-dense output
    """
    Lm = l_ref[...]                                   # (N, N)
    x = x_ref[...]                                    # (B*N, Fin)

    rows = []
    for b in range(batch):                            # static unroll over batch
        t = x[b * n_nodes:(b + 1) * n_nodes, :]       # T_0 = x_b  (N, Fin)
        feats = [t]
        for _ in range(order - 1):                    # T_k = L @ T_{k-1} = L^k x_b
            t = jnp.dot(Lm, t, preferred_element_type=jnp.float32)
            feats.append(t)
        rows.append(jnp.concatenate(feats, axis=1))   # (N, K*Fin)
    t_all = jnp.concatenate(rows, axis=0)             # (B*N, K*Fin)

    # One fused MXU matmul over all K orders, then ReLU, lane-dense store.
    out = jnp.dot(t_all, w_ref[...], preferred_element_type=jnp.float32)
    o_ref[...] = jnp.maximum(out, 0.0)


def chebynet_forward(x, L, W):
    B, N, Fin = x.shape
    K, _, Fout = W.shape
    Fout_p = ((Fout + 127) // 128) * 128              # lane-dense output width

    x2 = x.reshape(B * N, Fin).astype(jnp.float32)    # batch-major rows (free reshape)
    W2 = W.reshape(K * Fin, Fout).astype(jnp.float32)  # stack orders on contraction axis
    if Fout_p != Fout:
        W2 = jnp.pad(W2, ((0, 0), (0, Fout_p - Fout)))
    Lf = L.astype(jnp.float32)

    kernel = functools.partial(chebynet_kernel, batch=B, n_nodes=N, order=K)

    out_p = pl.pallas_call(
        kernel,
        out_shape=jax.ShapeDtypeStruct((B * N, Fout_p), jnp.float32),
        grid_spec=pltpu.PrefetchScalarGridSpec(
            num_scalar_prefetch=0,
            grid=(1,),
            in_specs=[
                pl.BlockSpec((B * N, Fin), lambda i: (0, 0)),      # x: resident
                pl.BlockSpec((N, N), lambda i: (0, 0)),            # L: resident
                pl.BlockSpec((K * Fin, Fout_p), lambda i: (0, 0)),  # W: resident
            ],
            out_specs=pl.BlockSpec((B * N, Fout_p), lambda i: (0, 0)),
        ),
        compiler_params=pltpu.CompilerParams(
            dimension_semantics=("arbitrary",)),
    )(x2, Lf, W2)

    return out_p.reshape(B, N, Fout_p)[..., :Fout]


def chebynet_ref(x, L, W):
    """Pure-JAX reference mirroring the PyTorch forward."""
    K = W.shape[0]
    N = L.shape[0]
    result = None
    adj_k = None
    for k in range(K):
        if k == 0:
            adj_k = jnp.eye(N, dtype=jnp.float32)
        elif k == 1:
            adj_k = L
        else:
            adj_k = adj_k @ L
        out = jnp.einsum('nm,bmf->bnf', adj_k, x) @ W[k]
        result = out if result is None else result + out
    return jax.nn.relu(result)


if __name__ == "__main__":
    # Small shapes consistent with the module: batch=2, N=16 electrodes,
    # Fin=8 input features (xdim[1]), Fout=32, K=3 Chebyshev orders.
    B, N, Fin, Fout, K = 2, 16, 8, 32, 3

    key = jax.random.PRNGKey(0)
    kx, kl, kw = jax.random.split(key, 3)

    x = jax.random.normal(kx, (B, N, Fin), dtype=jnp.float32)
    L = jax.random.normal(kl, (N, N), dtype=jnp.float32) * 0.1
    L = 0.5 * (L + L.T)  # symmetric adjacency-like matrix

    # kaiming_normal_ (fan_in, gain=sqrt(2)) deterministic init per order.
    W = jax.random.normal(kw, (K, Fin, Fout), dtype=jnp.float32) * jnp.sqrt(2.0 / Fin)

    out = chebynet_forward(x, L, W)
    out = jax.block_until_ready(out)

    ref = chebynet_ref(x, L, W)
    assert out.shape == (B, N, Fout)
    assert jnp.allclose(out, ref, atol=1e-4, rtol=1e-4), "mismatch vs reference"

    print("KERNEL_OK")
</pallas_src>

<mosaic_0001>
module attributes {stable_mosaic.version = 11 : i64} {
  func.func @chebynet_kernel(%arg0: i32, %arg1: memref<32x8xf32, #tpu.memory_space<vmem>>, %arg2: memref<16x16xf32, #tpu.memory_space<vmem>>, %arg3: memref<24x128xf32, #tpu.memory_space<vmem>>, %arg4: memref<32x128xf32, #tpu.memory_space<vmem>>) attributes {dimension_semantics = [#tpu.dimension_semantics<arbitrary>], iteration_bounds = array<i64: 1>, scalar_prefetch = 0 : i64, scratch_operands = 0 : i64, tpu.core_type = #tpu.core_type<tc>, window_params = [{pipeline_mode = #tpu.pipeline_mode<synchronous>, transform_indices = @transform_0, window_bounds = array<i64: 32, 8>}, {pipeline_mode = #tpu.pipeline_mode<synchronous>, transform_indices = @transform_1, window_bounds = array<i64: 16, 16>}, {pipeline_mode = #tpu.pipeline_mode<synchronous>, transform_indices = @transform_2, window_bounds = array<i64: 24, 128>}, {pipeline_mode = #tpu.pipeline_mode<synchronous>, transform_indices = @transform_3, window_bounds = array<i64: 32, 128>}]} {
    %c0 = arith.constant 0 : index
    %c0_0 = arith.constant 0 : index
    %0 = vector.load %arg2[%c0, %c0_0] : memref<16x16xf32, #tpu.memory_space<vmem>>, vector<16x16xf32>
    %c0_1 = arith.constant 0 : index
    %c0_2 = arith.constant 0 : index
    %1 = vector.load %arg1[%c0_1, %c0_2] : memref<32x8xf32, #tpu.memory_space<vmem>>, vector<32x8xf32>
    %2 = vector.extract_strided_slice %1 {offsets = [0, 0], sizes = [16, 8], strides = [1, 1]} : vector<32x8xf32> to vector<16x8xf32>
    %cst = arith.constant dense<0.000000e+00> : vector<16x8xf32>
    %3 = tpu.matmul %0, %2, %cst {dimension_numbers = #tpu.dot_dimension_numbers<[1], [0], [0], [1], [0, 0, 1, 1], [], []>} : vector<16x16xf32>, vector<16x8xf32>, vector<16x8xf32> -> vector<16x8xf32>
    %cst_3 = arith.constant dense<0.000000e+00> : vector<16x8xf32>
    %4 = tpu.matmul %0, %3, %cst_3 {dimension_numbers = #tpu.dot_dimension_numbers<[1], [0], [0], [1], [0, 0, 1, 1], [], []>} : vector<16x16xf32>, vector<16x8xf32>, vector<16x8xf32> -> vector<16x8xf32>
    %5 = tpu.concatenate %2, %3, %4 in 1 : vector<16x8xf32>, vector<16x8xf32>, vector<16x8xf32> -> vector<16x24xf32>
    %6 = vector.extract_strided_slice %1 {offsets = [16, 0], sizes = [16, 8], strides = [1, 1]} : vector<32x8xf32> to vector<16x8xf32>
    %cst_4 = arith.constant dense<0.000000e+00> : vector<16x8xf32>
    %7 = tpu.matmul %0, %6, %cst_4 {dimension_numbers = #tpu.dot_dimension_numbers<[1], [0], [0], [1], [0, 0, 1, 1], [], []>} : vector<16x16xf32>, vector<16x8xf32>, vector<16x8xf32> -> vector<16x8xf32>
    %cst_5 = arith.constant dense<0.000000e+00> : vector<16x8xf32>
    %8 = tpu.matmul %0, %7, %cst_5 {dimension_numbers = #tpu.dot_dimension_numbers<[1], [0], [0], [1], [0, 0, 1, 1], [], []>} : vector<16x16xf32>, vector<16x8xf32>, vector<16x8xf32> -> vector<16x8xf32>
    %9 = tpu.concatenate %6, %7, %8 in 1 : vector<16x8xf32>, vector<16x8xf32>, vector<16x8xf32> -> vector<16x24xf32>
    %10 = tpu.concatenate %5, %9 in 0 : vector<16x24xf32>, vector<16x24xf32> -> vector<32x24xf32>
    %c0_6 = arith.constant 0 : index
    %c0_7 = arith.constant 0 : index
    %11 = vector.load %arg3[%c0_6, %c0_7] : memref<24x128xf32, #tpu.memory_space<vmem>>, vector<24x128xf32>
    %cst_8 = arith.constant dense<0.000000e+00> : vector<32x128xf32>
    %12 = tpu.matmul %10, %11, %cst_8 {dimension_numbers = #tpu.dot_dimension_numbers<[1], [0], [0], [1], [0, 0, 1, 1], [], []>} : vector<32x24xf32>, vector<24x128xf32>, vector<32x128xf32> -> vector<32x128xf32>
    %cst_9 = arith.constant 0.000000e+00 : f32
    %13 = vector.broadcast %cst_9 : f32 to vector<32x128xf32>
    %14 = arith.maximumf %12, %13 : vector<32x128xf32>
    %c0_10 = arith.constant 0 : index
    %c0_11 = arith.constant 0 : index
    %15 = vector.load %arg4[%c0_10, %c0_11] : memref<32x128xf32, #tpu.memory_space<vmem>>, vector<32x128xf32>
    tpu.vector_store %arg4[%c0_10, %c0_11], %14 {strides = array<i32>} : memref<32x128xf32, #tpu.memory_space<vmem>>, vector<32x128xf32>,
    return
  }
  func.func @transform_0(%arg0: i32) -> (i32, i32) {
    %c0_i32 = arith.constant 0 : i32
    %c0_i32_0 = arith.constant 0 : i32
    %c0_i32_1 = arith.constant 0 : i32
    return %c0_i32, %c0_i32_0 : i32, i32
  }
  func.func @transform_1(%arg0: i32) -> (i32, i32) {
    %c0_i32 = arith.constant 0 : i32
    %c0_i32_0 = arith.constant 0 : i32
    %c0_i32_1 = arith.constant 0 : i32
    return %c0_i32, %c0_i32_0 : i32, i32
  }
  func.func @transform_2(%arg0: i32) -> (i32, i32) {
    %c0_i32 = arith.constant 0 : i32
    %c0_i32_0 = arith.constant 0 : i32
    %c0_i32_1 = arith.constant 0 : i32
    return %c0_i32, %c0_i32_0 : i32, i32
  }
  func.func @transform_3(%arg0: i32) -> (i32, i32) {
    %c0_i32 = arith.constant 0 : i32
    %c0_i32_0 = arith.constant 0 : i32
    %c0_i32_1 = arith.constant 0 : i32
    return %c0_i32, %c0_i32_0 : i32, i32
  }
}

</mosaic_0001>

<bundles_post_ra>
// kernel: tpu_custom_call.1
= control target key start
LH: loop header
LB: loop body
LE: loop exit
PB: predicated region body
PF: predicated region fallthrough
CT: control target
= control target key end

     0   :  { %vm21_vm0 = vcmask 130048   ;;  %s705_s0 = inlined_call_operand.vmem [shape: f32[32,8], index: 0, kind: input, shape index: {}]   ;;  %s706_s1 = inlined_call_operand.vmem [shape: f32[16,16], index: 1, kind: input, shape index: {}]   ;;  %s707_s2 = inlined_call_operand.vmem [shape: f32[24,128], index: 2, kind: input, shape index: {}]   ;;  %s708_s3 = inlined_call_operand.hbm [shape: f32[32,128], index: 3, kind: output, shape index: {}]  }
   0x1   :  { %v17_v0 = vld [vmem:[%s705_s0] sm:$0xff]  ;;  %v18_v1 = vld [vmem:[%s705_s0 + $0x8] sm:$0xff]  ;;  %v19_v4 = vld [vmem:[%s705_s0 + $0x10] sm:$0xff] }
   0x2   :  { %v15_v2 = vld [vmem:[%s706_s1] sm:$0xff]  ;;  %v569_v3 = vpack.c.bf16 %v18_v1, %v17_v0  ;;  %v657_v5 = vld [vmem:[%s705_s0 + $0x18] sm:$0xff] }
   0x3   :  { %533 = vmatprep.mubr.msk.f32.mxu1 %vm21_vm0, %v15_v2  ;;  %547 = vmatprep.mubr.msk.f32.mxu0 %vm21_vm0, %v15_v2  ;;  %v577_v6 = vpack.c.bf16 %v657_v5, %v19_v4 }
   0x4   :  { %8 = vsyncpa [#allocation3], 0  ;;  %570 = vmatprep.subr.bf16.mxu1 %v569_v3  ;;  %v16_v7 = vld [vmem:[%s706_s1 + $0x8] sm:$0xff]  ;;  %s617_s0 = smov 8   ;;  %v369_v14 = vld [vmem:[%s707_s2] sm:$0xff]  ;;  %s618_s29 = smov 16  }
   0x5   :  { %572 = vmatpush3.bf16.msra.mxu1 %v569_v3  ;;  %578 = vmatprep.subr.bf16.mxu0 %v577_v6  ;;  %v370_v15 = vld [vmem:[%s707_s2 + $0x8] sm:$0xff]  ;;  %v371_v17 = vld [vmem:[%s707_s2 + $0x10] sm:$0xff]  ;;  %vm194_vm1 = vcmask 64512   ;;  %vm372_vm2 = vcmask 195584   ;;  %s619_s2 = smov [#allocation2]  }
   0x6   :  { %580 = vmatpush3.bf16.msra.mxu0 %v577_v6  ;;  %v585_v16 = vpack.c.bf16 %v370_v15, %v369_v14  ;;  %s483_s30 = sshll.u32 %s619_s2, 4  ;;  %s484_s30 = int_to_ptr.vmem [resolvable:$true] %s483_s30 }
   0x7   :  { %s593_s4 = scalar_lea.vmem %s484_s30, 512  ;;  %p598_p1 = scmp.lt.s32.totalorder %s484_s30, %s484_s30 }
   0x8   :  { %534 = vmatmul.mubr.msk.f32.vlgmr.msra.gmra.mrb[0].mxu1 %vm21_vm0, %v16_v7  ;;  %586 = vmatprep.subr.bf16.mxu0 %v585_v16  ;;  %p594_p0 = scmp.ne.s32.totalorder %s484_s30, %s593_s4  ;;  %p599_p2 = scmp.lt.s32.totalorder %s593_s4, %s593_s4 }
   0x9   :  { %548 = vmatmul.mubr.msk.f32.vlgmr.msra.gmra.mrb[0].mxu0 %vm21_vm0, %v16_v7  ;;  %540 = vmatprep.mubr.msk.f32.mxu1 %vm21_vm0, %v15_v2 }
   0xa   :  { %588 = vmatpush3.bf16.msra.mxu0 %v585_v16  ;;  %p600_p3 = por %p599_p2, %p598_p1 }
   0xb   :  { %561 = vmatprep.subr.mxu0 %v371_v17 }
   0xc   :  { %p601_p4 = pnand %p600_p3, %p594_p0 }
   0xe   :  { %562 = vmatpush3.msra.mxu0 %v371_v17 }
  0xdb   :  { %v535_v8 = vpop.f32.mrb[0].mxu1 }
  0xdc   :  { %182 = vrot.lane.b32.xlu0 %v535_v8, %s617_s0  ;;  %v94_v9 = vpop.f32.mrb[1].mxu1  ;;  %v549_v10 = vpop.f32.mrb[0].mxu0 }
  0xdd   :  { %v573_v11 = vpack.c.bf16 %v535_v8, %v94_v9  ;;  %v265_v12 = vpop.f32.mrb[1].mxu0 }
  0xde   :  { %v581_v13 = vpack.c.bf16 %v549_v10, %v265_v12 }
  0xdf   :  { %574 = vmatprep.subr.bf16.mxu1 %v573_v11 }
  0xe0   :  { %180 = vrot.lane.b32.xlu0 %v94_v9, %s617_s0  ;;  %576 = vmatpush3.bf16.msra.mxu1 %v573_v11 }
  0xe1   :  { %582 = vmatprep.subr.bf16.mxu1 %v581_v13 }
  0xe3   :  { %541 = vmatmul.mubr.msk.f32.vlgmr.msra.gmra.mrb[2].mxu1 %vm21_vm0, %v16_v7 }
  0xe4   :  { %584 = vmatpush3.bf16.msra.mxu1 %v581_v13  ;;  %351 = vrot.lane.b32.xlu0 %v265_v12, %s617_s0 }
  0xe5   :  { %554 = vmatprep.mubr.msk.f32.mxu1 %vm21_vm0, %v15_v2 }
  0xe7   :  { %555 = vmatmul.mubr.msk.f32.vlgmr.msra.gmra.mrb[4].mxu1 %vm21_vm0, %v16_v7 }
 0x14e   :  { %v183_v22 = vpop.permute.xlu0 %182 }
 0x14f   :  { %v196_v28 = vsel %vm194_vm1, %v18_v1, %v183_v22 }
 0x152   :  { %v181_v23 = vpop.permute.xlu0 %180 }
 0x153   :  { %v195_v26 = vsel %vm194_vm1, %v17_v0, %v181_v23 }
 0x156   :  { %v352_v25 = vpop.permute.xlu0 %351 }
 0x157   :  { %v365_v29 = vsel %vm194_vm1, %v19_v4, %v352_v25 }
 0x1b6   :  { %v542_v18 = vpop.f32.mrb[2].mxu1 }
 0x1b7   :  { %190 = vrot.lane.b32.xlu1 %v542_v18, %s618_s29  ;;  %v169_v19 = vpop.f32.mrb[3].mxu1 }
 0x1ba   :  { %v556_v20 = vpop.f32.mrb[4].mxu1 }
 0x1bb   :  { %188 = vrot.lane.b32.xlu1 %v169_v19, %s618_s29  ;;  %v340_v21 = vpop.f32.mrb[5].mxu1 }
 0x1bc   :  { %359 = vrot.lane.b32.xlu0 %v340_v21, %s618_s29 }
 0x1bf   :  { %353 = vrot.lane.b32.xlu1 %v549_v10, %s617_s0 }
 0x1c3   :  { %361 = vrot.lane.b32.xlu1 %v556_v20, %s618_s29 }
 0x229   :  { %v191_v24 = vpop.permute.xlu1 %190 }
 0x22a   :  { %v198_v32 = vsel %vm21_vm0, %v196_v28, %v191_v24 }
 0x22d   :  { %v189_v27 = vpop.permute.xlu1 %188 }
 0x22e   :  { %v197_v30 = vsel %vm21_vm0, %v195_v26, %v189_v27  ;;  %v360_v31 = vpop.permute.xlu0 %359 }
 0x22f   :  { %v367_v33 = vsel %vm21_vm0, %v365_v29, %v360_v31  ;;  %563 = vmatprep.mubr.msk.f32.mxu0 %vm372_vm2, %v197_v30 }
 0x230   :  { %564 = vmatmul.mubr.msk.f32.vlgmr.msra.gmra.mrb[2].mxu0 %vm372_vm2, %v198_v32 }
 0x231   :  { %v354_v34 = vpop.permute.xlu1 %353  ;;  %566 = vmatprep.mubr.msk.f32.mxu0 %vm372_vm2, %v367_v33 }
 0x232   :  { %v366_v35 = vsel %vm194_vm1, %v657_v5, %v354_v34 }
 0x235   :  { %v362_v36 = vpop.permute.xlu1 %361 }
 0x236   :  { %v368_v37 = vsel %vm21_vm0, %v366_v35, %v362_v36 }
 0x237   :  { %567 = vmatmul.mubr.msk.f32.gmra.mrb[4].mxu0 %vm372_vm2, %v368_v37 }
 0x303   :  { %v565_v38 = vpop.f32.mrb[2].mxu0 }
 0x304   :  { %v471_v39 = vmax.f32 %v565_v38, 0.0  ;;  %v451_v40 = vpop.f32.mrb[3].mxu0 }
 0x305   :  { %v470_v41 = vmax.f32 %v451_v40, 0.0 }
 0x306   :  { %475 = vst [vmem:[#allocation2 + $0x8] sm:$0xff] %v471_v39 }
 0x307   :  { %474 = vst [vmem:[#allocation2] sm:$0xff] %v470_v41 }
 0x30a   :  { %v568_v42 = vpop.f32.mrb[4].mxu0 }
 0x30b   :  { %v473_v43 = vmax.f32 %v568_v42, 0.0  ;;  %v461_v44 = vpop.f32.mrb[5].mxu0 }
 0x30c   :  { %v472_v45 = vmax.f32 %v461_v44, 0.0 }
 0x30d   :  { %477 = vst [vmem:[#allocation2 + $0x18] sm:$0xff] %v473_v43 }
 0x30e   :  { %476 = vst [vmem:[#allocation2 + $0x10] sm:$0xff] %v472_v45 }
 0x30f   :  { %604 = shalt.err (!%p601_p4)
}
 0x310   :  { %s605_s7 = scalar_lea.hbm %s708_s3, 512 }
 0x311   :  { %p606_p5 = scmp.ne.s32.totalorder %s708_s3, %s605_s7  ;;  %p609_p6 = scmp.lt.u32.totalorder %s605_s7, %s708_s3 }
 0x313   :  { %p611_p7 = pnand %p609_p6, %p606_p5 }
 0x315   :  { %614 = shalt.err (!%p611_p7)
}
 0x316   :  { %s620_s12 = smov 128  }
 0x317   :  { %489 = dma.vmem_to_hbm [thread:$0]  %s484_s30, 512, %s708_s3, [#allocation3], %s620_s12, %s620_s12, %s617_s0  }
 0x318   :  { %615 = dma.done.wait [#allocation3], 512  }
 0x319   :  { %616 = vsyncadd [#allocation3], 4294966784 }
 0x31a   :  { %493 = vsyncpa [#allocation3], 1 }

</bundles_post_ra>
